<compile_context>
chip_gen: v6e
topology: v6e:2x2x1
jax: 0.10.0
libtpu: 0.0.40
codegen_flags: <defaults>
</compile_context>

<pallas_src>
import jax
import jax.numpy as jnp
from jax import lax
from jax.experimental import pallas as pl
from jax.experimental.pallas import tpu as pltpu


# --------------------------------- helpers -----------------------------------

def _round_up(x, m):
    return ((x + m - 1) // m) * m


def _pad2d(x, rows, cols):
    r, c = x.shape
    return jnp.pad(x, ((0, rows - r), (0, cols - c)))


# ----------------------------- fused Pallas kernel ---------------------------

def make_fused_kernel(T, B_pad, H, V_pad, head_block, n_head):
    """Fused in-kernel token gather + LSTM recurrence + Linear/ReLU head.

    Ref layout (all whole-array VMEM):
      tok_ref  : (T*B_pad, 1) int32   time-major padded tokens
      slab_ref : (V_pad + H + n_head*head_block, LANE) f32 packed weights:
                   rows [0, V_pad)            gate_table = embed @ W_ih + bias
                   rows [V_pad, V_pad+H)      W_hh (H, 4H)
                   per head layer k, a head_block-row block at
                   V_pad + H + k*head_block:  rows [0,H) weight (H,H), row H bias
      out_ref  : (B_pad, H) f32  final hidden state after the head
    """
    four_h = 4 * H

    def kernel(tok_ref, slab_ref, out_ref):
        # ---- in-kernel embedding gather: one_hot(tokens) @ gate_table on MXU ----
        tok = tok_ref[...]                                             # (T*B_pad, 1)
        vocab_iota = lax.broadcasted_iota(jnp.int32, (T * B_pad, V_pad), 1)
        one_hot = (tok == vocab_iota).astype(jnp.float32)              # (T*B_pad, V_pad)
        gate_table = slab_ref[0:V_pad, 0:four_h]                       # (V_pad, 4H)
        gates_in = jnp.dot(one_hot, gate_table,
                           preferred_element_type=jnp.float32)         # (T*B_pad, 4H)

        # Recurrent weight: cast once to bf16 so each per-step matmul is a single
        # MXU pass (accumulation stays f32 via preferred_element_type).
        # TODO(synk): on v7x, pltpu.matmul_push_rhs could keep W_hh staged in the
        # MXU across all T steps instead of re-staging it in every jnp.dot.
        whh = slab_ref[V_pad:V_pad + H, 0:four_h].astype(jnp.bfloat16)  # (H, 4H)

        # ---- t = 0: h = c = 0, so skip the h @ W_hh matmul entirely ----
        gates = gates_in[0:B_pad, :]
        sig = jax.nn.sigmoid(gates)          # one EUP pass over the full gate vreg
        th = jnp.tanh(gates)
        c = sig[:, 0 * H:1 * H] * th[:, 2 * H:3 * H]        # i * g   (f*c term is 0)
        h = sig[:, 3 * H:4 * H] * jnp.tanh(c)               # o * tanh(c)

        # ---- t = 1 .. T-1: fully unrolled recurrence ----
        # TODO(synk): if the bundle shows lane rotates from the sub-vreg gate
        # slices below, realign the gate quarters with pltpu.roll on the XLU.
        for t in range(1, T):
            g_x = gates_in[t * B_pad:(t + 1) * B_pad, :]               # (B_pad, 4H)
            gates = g_x + jnp.dot(h.astype(jnp.bfloat16), whh,
                                  preferred_element_type=jnp.float32)
            sig = jax.nn.sigmoid(gates)
            th = jnp.tanh(gates)
            i_g = sig[:, 0 * H:1 * H]
            f_g = sig[:, 1 * H:2 * H]
            g_g = th[:, 2 * H:3 * H]
            o_g = sig[:, 3 * H:4 * H]
            c = f_g * c + i_g * g_g
            h = o_g * jnp.tanh(c)

        # ---- fused head epilogue: Linear + ReLU layers (no extra launches) ----
        base = V_pad + H
        for k in range(n_head):
            off = base + k * head_block
            w = slab_ref[off:off + H, 0:H].astype(jnp.bfloat16)        # (H, H)
            b = slab_ref[off + H:off + H + 1, 0:H]                      # (1, H)
            h = jnp.maximum(
                jnp.dot(h.astype(jnp.bfloat16), w,
                        preferred_element_type=jnp.float32) + b, 0.0)

        out_ref[...] = h

    return kernel


# ------------------------------ param packing --------------------------------

def pack_params(params):
    """One-time packing (NOT per forward call): fold embed @ W_ih + bias into a
    gate table and pack every kernel weight into a single lane-padded f32 slab."""
    embed, w_ih, w_hh, bias = (params["embed"], params["w_ih"],
                               params["w_hh"], params["bias"])
    head = params["head"]
    V = embed.shape[0]
    H = w_hh.shape[0]
    four_h = 4 * H
    lane = max(128, four_h)
    v_pad = _round_up(V, 128)
    head_block = _round_up(H + 1, 8)          # keep head blocks sublane-aligned

    # Exact algebra: embedding row -> pre-activation gates contribution.
    gate_table = embed @ w_ih + bias                                  # (V, 4H)

    blocks = [_pad2d(gate_table.astype(jnp.float32), v_pad, lane),
              _pad2d(w_hh.astype(jnp.float32), H, lane)]
    for (w, b) in head:
        blocks.append(_pad2d(jnp.concatenate([w, b], axis=0).astype(jnp.float32),
                             head_block, lane))
    slab = jnp.concatenate(blocks, axis=0)

    meta = {"hidden": H, "v_pad": v_pad, "head_block": head_block,
            "n_head": len(head)}
    return slab, meta


# --------------------------------- wrapper ------------------------------------

def make_forward(meta):
    H = meta["hidden"]
    v_pad = meta["v_pad"]
    head_block = meta["head_block"]
    n_head = meta["n_head"]

    @jax.jit
    def forward(tokens, slab):
        B, T = tokens.shape
        b_pad = max(8, _round_up(B, 8))       # pad batch to a full sublane
        # Padded batch rows use token 0 (the padding index); they compute garbage
        # and are dropped below.  Time-major flatten so the kernel slices one
        # (B_pad, 4H) block of gates per step.
        tokens_p = jnp.zeros((b_pad, T), jnp.int32).at[:B, :].set(tokens)
        tok_tm = tokens_p.T.reshape(T * b_pad, 1)

        vmem = pl.BlockSpec(memory_space=pltpu.MemorySpace.VMEM)
        kernel = make_fused_kernel(T, b_pad, H, v_pad, head_block, n_head)
        h = pl.pallas_call(
            kernel,
            out_shape=jax.ShapeDtypeStruct((b_pad, H), jnp.float32),
            in_specs=[vmem, vmem],            # 2 DMAs: tokens + packed weight slab
            out_specs=vmem,
        )(tok_tm, slab)
        return h[:B]

    return forward


# ------------------------- deterministic parameters --------------------------

def init_params(key, vocab_size, embed_dim, hidden, head_layers):
    ks = jax.random.split(key, 6 + 2 * head_layers)
    # nn.Embedding: N(0,1), padding_idx=0 row zeroed.
    embed = jax.random.normal(ks[0], (vocab_size, embed_dim), jnp.float32)
    embed = embed.at[0].set(0.0)

    # nn.LSTM: U(-1/sqrt(H), 1/sqrt(H)); torch layout (4H, E)/(4H, H) -> transpose.
    s = 1.0 / jnp.sqrt(hidden)
    w_ih_t = jax.random.uniform(ks[1], (4 * hidden, embed_dim), jnp.float32, -s, s)
    w_hh_t = jax.random.uniform(ks[2], (4 * hidden, hidden), jnp.float32, -s, s)
    b_ih = jax.random.uniform(ks[3], (4 * hidden,), jnp.float32, -s, s)
    b_hh = jax.random.uniform(ks[4], (4 * hidden,), jnp.float32, -s, s)

    head = []
    for i in range(head_layers):
        sl = 1.0 / jnp.sqrt(hidden)
        w_t = jax.random.uniform(ks[5 + 2 * i], (hidden, hidden), jnp.float32, -sl, sl)
        b = jax.random.uniform(ks[6 + 2 * i], (hidden,), jnp.float32, -sl, sl)
        head.append((jnp.transpose(w_t), b.reshape(1, hidden)))

    return {
        "embed": embed,
        "w_ih": jnp.transpose(w_ih_t),                     # (E, 4H)
        "w_hh": jnp.transpose(w_hh_t),                     # (H, 4H)
        "bias": (b_ih + b_hh).reshape(1, 4 * hidden),      # (1, 4H)
        "head": head,
    }


# ------------------------------ pure-JAX reference ---------------------------

def reference_forward(tokens, params):
    emb = jnp.take(params["embed"], tokens, axis=0)        # (B, T, E)
    B, T, _ = emb.shape
    H = params["w_hh"].shape[0]
    h = jnp.zeros((B, H), jnp.float32)
    c = jnp.zeros((B, H), jnp.float32)
    for t in range(T):
        gates = emb[:, t, :] @ params["w_ih"] + h @ params["w_hh"] + params["bias"]
        i_g = jax.nn.sigmoid(gates[:, 0 * H:1 * H])
        f_g = jax.nn.sigmoid(gates[:, 1 * H:2 * H])
        g_g = jnp.tanh(gates[:, 2 * H:3 * H])
        o_g = jax.nn.sigmoid(gates[:, 3 * H:4 * H])
        c = f_g * c + i_g * g_g
        h = o_g * jnp.tanh(c)
    for (w, b) in params["head"]:
        h = jnp.maximum(h @ w + b, 0.0)
    return h


# ----------------------------------- main ------------------------------------

if __name__ == "__main__":
    VOCAB, EMBED, HIDDEN, HEAD_LAYERS = 50, 32, 32, 2
    B, T = 2, 8

    key = jax.random.PRNGKey(0)
    k_tok, k_par = jax.random.split(key)
    params = init_params(k_par, VOCAB, EMBED, HIDDEN, HEAD_LAYERS)
    tokens = jax.random.randint(k_tok, (B, T), 0, VOCAB, dtype=jnp.int32)

    slab, meta = pack_params(params)          # one-time packing, outside hot path
    slab = jax.block_until_ready(slab)
    forward = make_forward(meta)

    out = jax.block_until_ready(forward(tokens, slab))
    ref = jax.block_until_ready(reference_forward(tokens, params))

    assert out.shape == (B, HIDDEN)
    # bf16 MXU operands on the recurrent / head matmuls (f32 accumulation) =>
    # compare against the pure-f32 reference with a correspondingly looser tol.
    assert jnp.allclose(out, ref, rtol=3e-2, atol=3e-2), "mismatch vs reference"

    print("KERNEL_OK")
</pallas_src>

<mosaic_0001>
module attributes {stable_mosaic.version = 11 : i64} {
  func.func @kernel(%arg0: memref<64x1xi32, #tpu.memory_space<vmem>>, %arg1: memref<240x128xf32, #tpu.memory_space<vmem>>, %arg2: memref<8x32xf32, #tpu.memory_space<vmem>>) attributes {dimension_semantics = [], scalar_prefetch = 0 : i64, scratch_operands = 0 : i64, tpu.core_type = #tpu.core_type<tc>} {
    %c0 = arith.constant 0 : index
    %c0_0 = arith.constant 0 : index
    %0 = vector.load %arg0[%c0, %c0_0] : memref<64x1xi32, #tpu.memory_space<vmem>>, vector<64x1xi32>
    %1 = tpu.iota {dimensions = array<i32: 1>} : vector<64x128xi32>
    %2 = vector.broadcast %0 : vector<64x1xi32> to vector<64x128xi32>
    %3 = arith.cmpi eq, %2, %1 : vector<64x128xi32>
    %4 = arith.extui %3 : vector<64x128xi1> to vector<64x128xi32>
    %5 = arith.sitofp %4 : vector<64x128xi32> to vector<64x128xf32>
    %c0_1 = arith.constant 0 : index
    %c0_2 = arith.constant 0 : index
    %6 = vector.load %arg1[%c0_1, %c0_2] : memref<240x128xf32, #tpu.memory_space<vmem>>, vector<128x128xf32>
    %cst = arith.constant dense<0.000000e+00> : vector<64x128xf32>
    %7 = tpu.matmul %5, %6, %cst {dimension_numbers = #tpu.dot_dimension_numbers<[1], [0], [0], [1], [0, 0, 1, 1], [], []>} : vector<64x128xf32>, vector<128x128xf32>, vector<64x128xf32> -> vector<64x128xf32>
    %c128 = arith.constant 128 : index
    %c0_3 = arith.constant 0 : index
    %8 = vector.load %arg1[%c128, %c0_3] : memref<240x128xf32, #tpu.memory_space<vmem>>, vector<32x128xf32>
    %9 = arith.truncf %8 : vector<32x128xf32> to vector<32x128xbf16>
    %10 = vector.extract_strided_slice %7 {offsets = [0, 0], sizes = [8, 128], strides = [1, 1]} : vector<64x128xf32> to vector<8x128xf32>
    %11 = arith.negf %10 : vector<8x128xf32>
    %12 = math.exp %11 : vector<8x128xf32>
    %cst_4 = arith.constant 1.000000e+00 : f32
    %13 = vector.broadcast %cst_4 : f32 to vector<8x128xf32>
    %14 = arith.addf %13, %12 : vector<8x128xf32>
    %15 = arith.divf %13, %14 : vector<8x128xf32>
    %16 = math.tanh %10 : vector<8x128xf32>
    %17 = vector.extract_strided_slice %15 {offsets = [0, 0], sizes = [8, 32], strides = [1, 1]} : vector<8x128xf32> to vector<8x32xf32>
    %18 = vector.extract_strided_slice %16 {offsets = [0, 64], sizes = [8, 32], strides = [1, 1]} : vector<8x128xf32> to vector<8x32xf32>
    %19 = arith.mulf %17, %18 : vector<8x32xf32>
    %20 = vector.extract_strided_slice %15 {offsets = [0, 96], sizes = [8, 32], strides = [1, 1]} : vector<8x128xf32> to vector<8x32xf32>
    %21 = math.tanh %19 : vector<8x32xf32>
    %22 = arith.mulf %20, %21 : vector<8x32xf32>
    %23 = vector.extract_strided_slice %7 {offsets = [8, 0], sizes = [8, 128], strides = [1, 1]} : vector<64x128xf32> to vector<8x128xf32>
    %24 = arith.truncf %22 : vector<8x32xf32> to vector<8x32xbf16>
    %cst_5 = arith.constant dense<0.000000e+00> : vector<8x128xf32>
    %25 = tpu.matmul %24, %9, %cst_5 {dimension_numbers = #tpu.dot_dimension_numbers<[1], [0], [0], [1], [0, 0, 1, 1], [], []>} : vector<8x32xbf16>, vector<32x128xbf16>, vector<8x128xf32> -> vector<8x128xf32>
    %26 = arith.addf %23, %25 : vector<8x128xf32>
    %27 = arith.negf %26 : vector<8x128xf32>
    %28 = math.exp %27 : vector<8x128xf32>
    %cst_6 = arith.constant 1.000000e+00 : f32
    %29 = vector.broadcast %cst_6 : f32 to vector<8x128xf32>
    %30 = arith.addf %29, %28 : vector<8x128xf32>
    %31 = arith.divf %29, %30 : vector<8x128xf32>
    %32 = math.tanh %26 : vector<8x128xf32>
    %33 = vector.extract_strided_slice %31 {offsets = [0, 0], sizes = [8, 32], strides = [1, 1]} : vector<8x128xf32> to vector<8x32xf32>
    %34 = vector.extract_strided_slice %31 {offsets = [0, 32], sizes = [8, 32], strides = [1, 1]} : vector<8x128xf32> to vector<8x32xf32>
    %35 = vector.extract_strided_slice %32 {offsets = [0, 64], sizes = [8, 32], strides = [1, 1]} : vector<8x128xf32> to vector<8x32xf32>
    %36 = vector.extract_strided_slice %31 {offsets = [0, 96], sizes = [8, 32], strides = [1, 1]} : vector<8x128xf32> to vector<8x32xf32>
    %37 = arith.mulf %34, %19 : vector<8x32xf32>
    %38 = arith.mulf %33, %35 : vector<8x32xf32>
    %39 = arith.addf %37, %38 : vector<8x32xf32>
    %40 = math.tanh %39 : vector<8x32xf32>
    %41 = arith.mulf %36, %40 : vector<8x32xf32>
    %42 = vector.extract_strided_slice %7 {offsets = [16, 0], sizes = [8, 128], strides = [1, 1]} : vector<64x128xf32> to vector<8x128xf32>
    %43 = arith.truncf %41 : vector<8x32xf32> to vector<8x32xbf16>
    %cst_7 = arith.constant dense<0.000000e+00> : vector<8x128xf32>
    %44 = tpu.matmul %43, %9, %cst_7 {dimension_numbers = #tpu.dot_dimension_numbers<[1], [0], [0], [1], [0, 0, 1, 1], [], []>} : vector<8x32xbf16>, vector<32x128xbf16>, vector<8x128xf32> -> vector<8x128xf32>
    %45 = arith.addf %42, %44 : vector<8x128xf32>
    %46 = arith.negf %45 : vector<8x128xf32>
    %47 = math.exp %46 : vector<8x128xf32>
    %cst_8 = arith.constant 1.000000e+00 : f32
    %48 = vector.broadcast %cst_8 : f32 to vector<8x128xf32>
    %49 = arith.addf %48, %47 : vector<8x128xf32>
    %50 = arith.divf %48, %49 : vector<8x128xf32>
    %51 = math.tanh %45 : vector<8x128xf32>
    %52 = vector.extract_strided_slice %50 {offsets = [0, 0], sizes = [8, 32], strides = [1, 1]} : vector<8x128xf32> to vector<8x32xf32>
    %53 = vector.extract_strided_slice %50 {offsets = [0, 32], sizes = [8, 32], strides = [1, 1]} : vector<8x128xf32> to vector<8x32xf32>
    %54 = vector.extract_strided_slice %51 {offsets = [0, 64], sizes = [8, 32], strides = [1, 1]} : vector<8x128xf32> to vector<8x32xf32>
    %55 = vector.extract_strided_slice %50 {offsets = [0, 96], sizes = [8, 32], strides = [1, 1]} : vector<8x128xf32> to vector<8x32xf32>
    %56 = arith.mulf %53, %39 : vector<8x32xf32>
    %57 = arith.mulf %52, %54 : vector<8x32xf32>
    %58 = arith.addf %56, %57 : vector<8x32xf32>
    %59 = math.tanh %58 : vector<8x32xf32>
    %60 = arith.mulf %55, %59 : vector<8x32xf32>
    %61 = vector.extract_strided_slice %7 {offsets = [24, 0], sizes = [8, 128], strides = [1, 1]} : vector<64x128xf32> to vector<8x128xf32>
    %62 = arith.truncf %60 : vector<8x32xf32> to vector<8x32xbf16>
    %cst_9 = arith.constant dense<0.000000e+00> : vector<8x128xf32>
    %63 = tpu.matmul %62, %9, %cst_9 {dimension_numbers = #tpu.dot_dimension_numbers<[1], [0], [0], [1], [0, 0, 1, 1], [], []>} : vector<8x32xbf16>, vector<32x128xbf16>, vector<8x128xf32> -> vector<8x128xf32>
    %64 = arith.addf %61, %63 : vector<8x128xf32>
    %65 = arith.negf %64 : vector<8x128xf32>
    %66 = math.exp %65 : vector<8x128xf32>
    %cst_10 = arith.constant 1.000000e+00 : f32
    %67 = vector.broadcast %cst_10 : f32 to vector<8x128xf32>
    %68 = arith.addf %67, %66 : vector<8x128xf32>
    %69 = arith.divf %67, %68 : vector<8x128xf32>
    %70 = math.tanh %64 : vector<8x128xf32>
    %71 = vector.extract_strided_slice %69 {offsets = [0, 0], sizes = [8, 32], strides = [1, 1]} : vector<8x128xf32> to vector<8x32xf32>
    %72 = vector.extract_strided_slice %69 {offsets = [0, 32], sizes = [8, 32], strides = [1, 1]} : vector<8x128xf32> to vector<8x32xf32>
    %73 = vector.extract_strided_slice %70 {offsets = [0, 64], sizes = [8, 32], strides = [1, 1]} : vector<8x128xf32> to vector<8x32xf32>
    %74 = vector.extract_strided_slice %69 {offsets = [0, 96], sizes = [8, 32], strides = [1, 1]} : vector<8x128xf32> to vector<8x32xf32>
    %75 = arith.mulf %72, %58 : vector<8x32xf32>
    %76 = arith.mulf %71, %73 : vector<8x32xf32>
    %77 = arith.addf %75, %76 : vector<8x32xf32>
    %78 = math.tanh %77 : vector<8x32xf32>
    %79 = arith.mulf %74, %78 : vector<8x32xf32>
    %80 = vector.extract_strided_slice %7 {offsets = [32, 0], sizes = [8, 128], strides = [1, 1]} : vector<64x128xf32> to vector<8x128xf32>
    %81 = arith.truncf %79 : vector<8x32xf32> to vector<8x32xbf16>
    %cst_11 = arith.constant dense<0.000000e+00> : vector<8x128xf32>
    %82 = tpu.matmul %81, %9, %cst_11 {dimension_numbers = #tpu.dot_dimension_numbers<[1], [0], [0], [1], [0, 0, 1, 1], [], []>} : vector<8x32xbf16>, vector<32x128xbf16>, vector<8x128xf32> -> vector<8x128xf32>
    %83 = arith.addf %80, %82 : vector<8x128xf32>
    %84 = arith.negf %83 : vector<8x128xf32>
    %85 = math.exp %84 : vector<8x128xf32>
    %cst_12 = arith.constant 1.000000e+00 : f32
    %86 = vector.broadcast %cst_12 : f32 to vector<8x128xf32>
    %87 = arith.addf %86, %85 : vector<8x128xf32>
    %88 = arith.divf %86, %87 : vector<8x128xf32>
    %89 = math.tanh %83 : vector<8x128xf32>
    %90 = vector.extract_strided_slice %88 {offsets = [0, 0], sizes = [8, 32], strides = [1, 1]} : vector<8x128xf32> to vector<8x32xf32>
    %91 = vector.extract_strided_slice %88 {offsets = [0, 32], sizes = [8, 32], strides = [1, 1]} : vector<8x128xf32> to vector<8x32xf32>
    %92 = vector.extract_strided_slice %89 {offsets = [0, 64], sizes = [8, 32], strides = [1, 1]} : vector<8x128xf32> to vector<8x32xf32>
    %93 = vector.extract_strided_slice %88 {offsets = [0, 96], sizes = [8, 32], strides = [1, 1]} : vector<8x128xf32> to vector<8x32xf32>
    %94 = arith.mulf %91, %77 : vector<8x32xf32>
    %95 = arith.mulf %90, %92 : vector<8x32xf32>
    %96 = arith.addf %94, %95 : vector<8x32xf32>
    %97 = math.tanh %96 : vector<8x32xf32>
    %98 = arith.mulf %93, %97 : vector<8x32xf32>
    %99 = vector.extract_strided_slice %7 {offsets = [40, 0], sizes = [8, 128], strides = [1, 1]} : vector<64x128xf32> to vector<8x128xf32>
    %100 = arith.truncf %98 : vector<8x32xf32> to vector<8x32xbf16>
    %cst_13 = arith.constant dense<0.000000e+00> : vector<8x128xf32>
    %101 = tpu.matmul %100, %9, %cst_13 {dimension_numbers = #tpu.dot_dimension_numbers<[1], [0], [0], [1], [0, 0, 1, 1], [], []>} : vector<8x32xbf16>, vector<32x128xbf16>, vector<8x128xf32> -> vector<8x128xf32>
    %102 = arith.addf %99, %101 : vector<8x128xf32>
    %103 = arith.negf %102 : vector<8x128xf32>
    %104 = math.exp %103 : vector<8x128xf32>
    %cst_14 = arith.constant 1.000000e+00 : f32
    %105 = vector.broadcast %cst_14 : f32 to vector<8x128xf32>
    %106 = arith.addf %105, %104 : vector<8x128xf32>
    %107 = arith.divf %105, %106 : vector<8x128xf32>
    %108 = math.tanh %102 : vector<8x128xf32>
    %109 = vector.extract_strided_slice %107 {offsets = [0, 0], sizes = [8, 32], strides = [1, 1]} : vector<8x128xf32> to vector<8x32xf32>
    %110 = vector.extract_strided_slice %107 {offsets = [0, 32], sizes = [8, 32], strides = [1, 1]} : vector<8x128xf32> to vector<8x32xf32>
    %111 = vector.extract_strided_slice %108 {offsets = [0, 64], sizes = [8, 32], strides = [1, 1]} : vector<8x128xf32> to vector<8x32xf32>
    %112 = vector.extract_strided_slice %107 {offsets = [0, 96], sizes = [8, 32], strides = [1, 1]} : vector<8x128xf32> to vector<8x32xf32>
    %113 = arith.mulf %110, %96 : vector<8x32xf32>
    %114 = arith.mulf %109, %111 : vector<8x32xf32>
    %115 = arith.addf %113, %114 : vector<8x32xf32>
    %116 = math.tanh %115 : vector<8x32xf32>
    %117 = arith.mulf %112, %116 : vector<8x32xf32>
    %118 = vector.extract_strided_slice %7 {offsets = [48, 0], sizes = [8, 128], strides = [1, 1]} : vector<64x128xf32> to vector<8x128xf32>
    %119 = arith.truncf %117 : vector<8x32xf32> to vector<8x32xbf16>
    %cst_15 = arith.constant dense<0.000000e+00> : vector<8x128xf32>
    %120 = tpu.matmul %119, %9, %cst_15 {dimension_numbers = #tpu.dot_dimension_numbers<[1], [0], [0], [1], [0, 0, 1, 1], [], []>} : vector<8x32xbf16>, vector<32x128xbf16>, vector<8x128xf32> -> vector<8x128xf32>
    %121 = arith.addf %118, %120 : vector<8x128xf32>
    %122 = arith.negf %121 : vector<8x128xf32>
    %123 = math.exp %122 : vector<8x128xf32>
    %cst_16 = arith.constant 1.000000e+00 : f32
    %124 = vector.broadcast %cst_16 : f32 to vector<8x128xf32>
    %125 = arith.addf %124, %123 : vector<8x128xf32>
    %126 = arith.divf %124, %125 : vector<8x128xf32>
    %127 = math.tanh %121 : vector<8x128xf32>
    %128 = vector.extract_strided_slice %126 {offsets = [0, 0], sizes = [8, 32], strides = [1, 1]} : vector<8x128xf32> to vector<8x32xf32>
    %129 = vector.extract_strided_slice %126 {offsets = [0, 32], sizes = [8, 32], strides = [1, 1]} : vector<8x128xf32> to vector<8x32xf32>
    %130 = vector.extract_strided_slice %127 {offsets = [0, 64], sizes = [8, 32], strides = [1, 1]} : vector<8x128xf32> to vector<8x32xf32>
    %131 = vector.extract_strided_slice %126 {offsets = [0, 96], sizes = [8, 32], strides = [1, 1]} : vector<8x128xf32> to vector<8x32xf32>
    %132 = arith.mulf %129, %115 : vector<8x32xf32>
    %133 = arith.mulf %128, %130 : vector<8x32xf32>
    %134 = arith.addf %132, %133 : vector<8x32xf32>
    %135 = math.tanh %134 : vector<8x32xf32>
    %136 = arith.mulf %131, %135 : vector<8x32xf32>
    %137 = vector.extract_strided_slice %7 {offsets = [56, 0], sizes = [8, 128], strides = [1, 1]} : vector<64x128xf32> to vector<8x128xf32>
    %138 = arith.truncf %136 : vector<8x32xf32> to vector<8x32xbf16>
    %cst_17 = arith.constant dense<0.000000e+00> : vector<8x128xf32>
    %139 = tpu.matmul %138, %9, %cst_17 {dimension_numbers = #tpu.dot_dimension_numbers<[1], [0], [0], [1], [0, 0, 1, 1], [], []>} : vector<8x32xbf16>, vector<32x128xbf16>, vector<8x128xf32> -> vector<8x128xf32>
    %140 = arith.addf %137, %139 : vector<8x128xf32>
    %141 = arith.negf %140 : vector<8x128xf32>
    %142 = math.exp %141 : vector<8x128xf32>
    %cst_18 = arith.constant 1.000000e+00 : f32
    %143 = vector.broadcast %cst_18 : f32 to vector<8x128xf32>
    %144 = arith.addf %143, %142 : vector<8x128xf32>
    %145 = arith.divf %143, %144 : vector<8x128xf32>
    %146 = math.tanh %140 : vector<8x128xf32>
    %147 = vector.extract_strided_slice %145 {offsets = [0, 0], sizes = [8, 32], strides = [1, 1]} : vector<8x128xf32> to vector<8x32xf32>
    %148 = vector.extract_strided_slice %145 {offsets = [0, 32], sizes = [8, 32], strides = [1, 1]} : vector<8x128xf32> to vector<8x32xf32>
    %149 = vector.extract_strided_slice %146 {offsets = [0, 64], sizes = [8, 32], strides = [1, 1]} : vector<8x128xf32> to vector<8x32xf32>
    %150 = vector.extract_strided_slice %145 {offsets = [0, 96], sizes = [8, 32], strides = [1, 1]} : vector<8x128xf32> to vector<8x32xf32>
    %151 = arith.mulf %148, %134 : vector<8x32xf32>
    %152 = arith.mulf %147, %149 : vector<8x32xf32>
    %153 = arith.addf %151, %152 : vector<8x32xf32>
    %154 = math.tanh %153 : vector<8x32xf32>
    %155 = arith.mulf %150, %154 : vector<8x32xf32>
    %c160 = arith.constant 160 : index
    %c0_19 = arith.constant 0 : index
    %156 = vector.load %arg1[%c160, %c0_19] : memref<240x128xf32, #tpu.memory_space<vmem>>, vector<32x32xf32>
    %157 = arith.truncf %156 : vector<32x32xf32> to vector<32x32xbf16>
    %c192 = arith.constant 192 : index
    %c0_20 = arith.constant 0 : index
    %158 = vector.load %arg1[%c192, %c0_20] : memref<240x128xf32, #tpu.memory_space<vmem>>, vector<1x32xf32>
    %159 = arith.truncf %155 : vector<8x32xf32> to vector<8x32xbf16>
    %cst_21 = arith.constant dense<0.000000e+00> : vector<8x32xf32>
    %160 = tpu.matmul %159, %157, %cst_21 {dimension_numbers = #tpu.dot_dimension_numbers<[1], [0], [0], [1], [0, 0, 1, 1], [], []>} : vector<8x32xbf16>, vector<32x32xbf16>, vector<8x32xf32> -> vector<8x32xf32>
    %161 = vector.broadcast %158 : vector<1x32xf32> to vector<8x32xf32>
    %162 = arith.addf %160, %161 : vector<8x32xf32>
    %cst_22 = arith.constant 0.000000e+00 : f32
    %163 = vector.broadcast %cst_22 : f32 to vector<8x32xf32>
    %164 = arith.maximumf %162, %163 : vector<8x32xf32>
    %c200 = arith.constant 200 : index
    %c0_23 = arith.constant 0 : index
    %165 = vector.load %arg1[%c200, %c0_23] : memref<240x128xf32, #tpu.memory_space<vmem>>, vector<32x32xf32>
    %166 = arith.truncf %165 : vector<32x32xf32> to vector<32x32xbf16>
    %c232 = arith.constant 232 : index
    %c0_24 = arith.constant 0 : index
    %167 = vector.load %arg1[%c232, %c0_24] : memref<240x128xf32, #tpu.memory_space<vmem>>, vector<1x32xf32>
    %168 = arith.truncf %164 : vector<8x32xf32> to vector<8x32xbf16>
    %cst_25 = arith.constant dense<0.000000e+00> : vector<8x32xf32>
    %169 = tpu.matmul %168, %166, %cst_25 {dimension_numbers = #tpu.dot_dimension_numbers<[1], [0], [0], [1], [0, 0, 1, 1], [], []>} : vector<8x32xbf16>, vector<32x32xbf16>, vector<8x32xf32> -> vector<8x32xf32>
    %170 = vector.broadcast %167 : vector<1x32xf32> to vector<8x32xf32>
    %171 = arith.addf %169, %170 : vector<8x32xf32>
    %cst_26 = arith.constant 0.000000e+00 : f32
    %172 = vector.broadcast %cst_26 : f32 to vector<8x32xf32>
    %173 = arith.maximumf %171, %172 : vector<8x32xf32>
    %c0_27 = arith.constant 0 : index
    %c0_28 = arith.constant 0 : index
    %174 = vector.load %arg2[%c0_27, %c0_28] : memref<8x32xf32, #tpu.memory_space<vmem>>, vector<8x32xf32>
    tpu.vector_store %arg2[%c0_27, %c0_28], %173 {strides = array<i32>} : memref<8x32xf32, #tpu.memory_space<vmem>>, vector<8x32xf32>,
    return
  }
}

</mosaic_0001>

<bundles_post_ra>
// kernel: forward.1
= control target key start
LH: loop header
LB: loop body
LE: loop exit
PB: predicated region body
PF: predicated region fallthrough
CT: control target
= control target key end

     0   :  { %7 = vsyncpa [#allocation3], 0  ;;  %s1159_s9 = smov [#allocation2]   ;;  %s1327_s0 = inlined_call_operand.vmem [shape: s32[64,1], index: 0, kind: input, shape index: {}]   ;;  %s1328_s1 = inlined_call_operand.hbm [shape: f32[240,128], index: 1, kind: input, shape index: {}]   ;;  %s1329_s2 = inlined_call_operand.vmem [shape: f32[8,32], index: 2, kind: output, shape index: {}]  }
   0x1   :  { %s15_s10 = sshll.u32 %s1159_s9, 4  ;;  %s16_s10 = int_to_ptr.vmem [resolvable:$true] %s15_s10 }
   0x2   :  { %s1145_s11 = scalar_lea.vmem %s16_s10, 3840  ;;  %p1150_p1 = scmp.lt.s32.totalorder %s16_s10, %s16_s10 }
   0x3   :  { %p1146_p0 = scmp.ne.s32.totalorder %s16_s10, %s1145_s11  ;;  %p1151_p2 = scmp.lt.s32.totalorder %s1145_s11, %s1145_s11 }
   0x5   :  { %p1152_p3 = por %p1151_p2, %p1150_p1 }
   0x7   :  { %p1153_p4 = pnand %p1152_p3, %p1146_p0 }
   0x9   :  { %1156 = shalt.err (!%p1153_p4)
}
   0xa   :  { %s1160_s12 = smov 128   ;;  %s1161_s13 = smov 8  }
   0xb   :  { %21 = dma.hbm_to_vmem [thread:$0]  %s1328_s1, 3840, %s16_s10, [#allocation3], %s1160_s12, %s1160_s12, %s1161_s13  }
   0xc   :  { %1157 = dma.done.wait [#allocation3], 3840  }
   0xd   :  { %1158 = vsyncadd [#allocation3], 4294963456  ;;  %v1162_v0 = vmov 0   ;;  %v26_v1 = vld [vmem:[%s1327_s0] sm:$0xff]  ;;  %v99_v2 = vld [vmem:[#allocation2 + $0x78] sm:$0xff]  ;;  %v34_v19 = vlaneseq  ;;  %v1163_v22 = vmov 1.0  }
   0xe   :  { %1071 = vset.pattern.permute.xlu0 %v1162_v0  ;;  %1072 = vset.pattern.permute.xlu1 %v1162_v0  ;;  %v98_v3 = vld [vmem:[#allocation2 + $0x70] sm:$0xff]  ;;  %v27_v4 = vld [vmem:[%s1327_s0 + $0x8] sm:$0xff]  ;;  %v96_v6 = vld [vmem:[#allocation2 + $0x60] sm:$0xff]  ;;  %s1164_s1 = smov 64   ;;  %v1165_v36 = vmov 0.0   ;;  %vm1166_vm2 = vmmov 0  }
   0xf   :  { %37 = vperm.xlu0 %1071, %v26_v1   ;;  %945 = vmatprep.subr.mxu0 %v99_v2  ;;  %v97_v5 = vld [vmem:[#allocation2 + $0x68] sm:$0xff]  ;;  %v95_v7 = vld [vmem:[#allocation2 + $0x58] sm:$0xff]  ;;  %v94_v8 = vld [vmem:[#allocation2 + $0x50] sm:$0xff]  ;;  %v1193_v20 = vand.u32 127, %v34_v19  ;;  %s1167_s20 = smov 96   ;;  %s1168_s21 = smov 32  }
  0x10   :  { %946 = vmatpush3.msra.mxu0 %v99_v2  ;;  %v93_v9 = vld [vmem:[#allocation2 + $0x48] sm:$0xff]  ;;  %v92_v10 = vld [vmem:[#allocation2 + $0x40] sm:$0xff]  ;;  %v91_v11 = vld [vmem:[#allocation2 + $0x38] sm:$0xff]  ;;  %989 = vmatprep.subr.bf16.mxu1 %v1165_v36  ;;  %vm233_vm3 = vcmask 261120  }
  0x11   :  { %947 = vmatprep.subr.mxu0 %v98_v3  ;;  %v90_v12 = vld [vmem:[#allocation2 + $0x30] sm:$0xff]  ;;  %v89_v13 = vld [vmem:[#allocation2 + $0x28] sm:$0xff]  ;;  %v88_v14 = vld [vmem:[#allocation2 + $0x20] sm:$0xff]  ;;  %993 = vmatprep.mubr.msk.bf16.mxu1 %vm1166_vm2, %v1165_v36 }
  0x12   :  { %948 = vmatpush3.msra.mxu0 %v98_v3  ;;  %v87_v15 = vld [vmem:[#allocation2 + $0x18] sm:$0xff]  ;;  %v86_v16 = vld [vmem:[#allocation2 + $0x10] sm:$0xff]  ;;  %v85_v17 = vld [vmem:[#allocation2 + $0x8] sm:$0xff] }
  0x13   :  { %40 = vperm.xlu0 %1071, %v27_v4   ;;  %949 = vmatprep.subr.mxu0 %v97_v5  ;;  %v84_v18 = vld [vmem:[#allocation2] sm:$0xff]  ;;  %v207_v33 = vld [vmem:[#allocation2 + $0x90] sm:$0xff]  ;;  %v208_v34 = vld [vmem:[#allocation2 + $0x98] sm:$0xff] }
  0x14   :  { %950 = vmatpush3.msra.mxu0 %v97_v5  ;;  %v205_v35 = vld [vmem:[#allocation2 + $0x80] sm:$0xff]  ;;  %v1201_v37 = vpack.c.bf16 %v208_v34, %v207_v33  ;;  %v206_v38 = vld [vmem:[#allocation2 + $0x88] sm:$0xff]  ;;  %v28_v57 = vld [vmem:[%s1327_s0 + $0x10] sm:$0xff] }
  0x15   :  { %951 = vmatprep.subr.mxu0 %v96_v6  ;;  %v1207_v39 = vpack.c.bf16 %v206_v38, %v205_v35  ;;  %v29_v0 = vld [vmem:[%s1327_s0 + $0x18] sm:$0xff] }
  0x16   :  { %952 = vmatpush3.msra.mxu0 %v96_v6  ;;  %990 = vmatpush3.bf16.msra.mxu1 %v1201_v37 }
  0x17   :  { %953 = vmatprep.subr.mxu0 %v95_v7  ;;  %991 = vmatprep.subr.bf16.mxu1 %v1165_v36 }
  0x18   :  { %954 = vmatpush3.msra.mxu0 %v95_v7 }
  0x19   :  { %955 = vmatprep.subr.mxu0 %v94_v8 }
  0x1a   :  { %956 = vmatpush3.msra.mxu0 %v94_v8  ;;  %992 = vmatpush3.bf16.msra.mxu1 %v1207_v39 }
  0x1b   :  { %957 = vmatprep.subr.mxu0 %v93_v9  ;;  %997 = vmatprep.subr.bf16.mxu1 %v1165_v36 }
  0x1c   :  { %958 = vmatpush3.msra.mxu0 %v93_v9 }
  0x1d   :  { %959 = vmatprep.subr.mxu0 %v92_v10 }
  0x1e   :  { %960 = vmatpush3.msra.mxu0 %v92_v10 }
  0x1f   :  { %961 = vmatprep.subr.mxu0 %v91_v11 }
  0x20   :  { %962 = vmatpush3.msra.mxu0 %v91_v11 }
  0x21   :  { %963 = vmatprep.subr.mxu0 %v90_v12 }
  0x22   :  { %964 = vmatpush3.msra.mxu0 %v90_v12 }
  0x23   :  { %965 = vmatprep.subr.mxu0 %v89_v13 }
  0x24   :  { %966 = vmatpush3.msra.mxu0 %v89_v13 }
  0x25   :  { %967 = vmatprep.subr.mxu0 %v88_v14 }
  0x26   :  { %968 = vmatpush3.msra.mxu0 %v88_v14 }
  0x27   :  { %969 = vmatprep.subr.mxu0 %v87_v15 }
  0x28   :  { %970 = vmatpush3.msra.mxu0 %v87_v15 }
  0x29   :  { %971 = vmatprep.subr.mxu0 %v86_v16 }
  0x2a   :  { %972 = vmatpush3.msra.mxu0 %v86_v16 }
  0x2b   :  { %973 = vmatprep.subr.mxu0 %v85_v17 }
  0x2c   :  { %974 = vmatpush3.msra.mxu0 %v85_v17 }
  0x2d   :  { %975 = vmatprep.subr.mxu0 %v84_v18 }
  0x2e   :  { %976 = vmatpush3.msra.mxu0 %v84_v18 }
  0x2f   :  { %1029 = vmatprep.subr.bf16.mxu0 %v1165_v36 }
  0x8a   :  { %v38_v21 = vpop.permute.xlu0 %37 }
  0x8b   :  { %vm60_vm0 = vcmp.eq.s32.totalorder %v38_v21, %v1193_v20 }
  0x8c   :  { %977 = vmatprep.mubr.msk.f32.mxu0 %vm60_vm0, %v1163_v22 }
  0x8e   :  { %v41_v23 = vpop.permute.xlu0 %40 }
  0x8f   :  { %vm61_vm1 = vcmp.eq.s32.totalorder %v41_v23, %v1193_v20 }
  0x90   :  { %978 = vmatmul.mubr.msk.f32.vlgmr.msra.gmra.mxu0 %vm61_vm1, %v1163_v22 }
  0x91   :  { %1030 = vmatpush3.bf16.msra.mxu0 %v1201_v37 }
  0x92   :  { %1031 = vmatprep.subr.bf16.mxu0 %v1165_v36 }
  0x95   :  { %1032 = vmatpush3.bf16.msra.mxu0 %v1207_v39 }
  0x96   :  { %1045 = vmatprep.subr.bf16.mxu0 %v1165_v36 }
 0x150   :  { %v979_v24 = vpop.f32.mrf.mxu0 }
 0x152   :  { %v166_v25 = vpop.f32.mrf.mxu0 }
 0x153   :  { %1073 = vtanh.f32 %v166_v25  ;;  %v875_v27 = vmul.f32 -1.442695, %v166_v25 }
 0x155   :  { %1075 = vpow2.f32 %v875_v27 }
 0x160   :  { %v1074_v26 = vpop.eup %1073 }
 0x161   :  { %219 = vrot.lane.b32.xlu1 %v1074_v26, %s1164_s1 }
 0x162   :  { %v1076_v28 = vpop.eup %1075 }
 0x163   :  { %v214_v29 = vadd.f32 1.0, %v1076_v28 }
 0x165   :  { %1077 = vrcp.f32 %v214_v29 }
 0x172   :  { %v1078_v30 = vpop.eup %1077 }
 0x1d3   :  { %v220_v31 = vpop.permute.xlu1 %219 }
 0x1d4   :  { %v222_v32 = vmul.f32 %v1078_v30, %v220_v31 }
 0x1d6   :  { %1079 = vtanh.f32 %v222_v32 }
 0x1e3   :  { %v1080_v40 = vpop.eup %1079 }
 0x1e4   :  { %225 = vrot.lane.b32.xlu1 %v1080_v40, %s1167_s20 }
 0x256   :  { %v226_v41 = vpop.permute.xlu1 %225 }
 0x257   :  { %v228_v42 = vmul.f32 %v1078_v30, %v226_v41 }
 0x259   :  { %v229_v43 = vpack.c.bf16 %v228_v42, %v228_v42 }
 0x25b   :  { %231 = vrot.lane.b32.xlu0 %v229_v43, %s1168_s21 }
 0x25f   :  { %286 = vrot.lane.b32.xlu0 %v222_v32, %s1168_s21 }
 0x2cd   :  { %v232_v44 = vpop.permute.xlu0 %231 }
 0x2ce   :  { %994 = vmatmul.mubr.msk.bf16.vlgmr.msra.gmra.mxu1 %vm233_vm3, %v232_v44 }
 0x2cf   :  { %998 = vmatpush3.bf16.msra.mxu1 %v1201_v37  ;;  %1001 = vmatprep.mubr.msk.bf16.mxu1 %vm1166_vm2, %v1165_v36 }
 0x2d0   :  { %999 = vmatprep.subr.bf16.mxu1 %v1165_v36 }
 0x2d1   :  { %v287_v58 = vpop.permute.xlu0 %286 }
 0x2d3   :  { %1000 = vmatpush3.bf16.msra.mxu1 %v1207_v39 }
 0x2d4   :  { %1005 = vmatprep.subr.bf16.mxu1 %v1165_v36 }
 0x38e   :  { %v271_v45 = vpop.f32.mrf.mxu1 }
 0x38f   :  { %v277_v46 = vadd.f32 %v979_v24, %v271_v45  ;;  %v30_v45 = vld [vmem:[%s1327_s0 + $0x20] sm:$0xff] }
 0x390   :  { %v995_v47 = vpop.f32.mrf.mxu1 }
 0x391   :  { %1081 = vtanh.f32 %v277_v46  ;;  %v877_v51 = vmul.f32 -1.442695, %v277_v46 }
 0x392   :  { %v274_v48 = vpop.f32.mrf.mxu1 }
 0x393   :  { %1083 = vpow2.f32 %v877_v51  ;;  %v31_v51 = vld [vmem:[%s1327_s0 + $0x28] sm:$0xff] }
 0x394   :  { %v996_v49 = vpop.f32.mrf.mxu1 }
 0x39e   :  { %v1082_v50 = vpop.eup %1081 }
 0x39f   :  { %291 = vrot.lane.b32.xlu1 %v1082_v50, %s1164_s1 }
 0x3a0   :  { %v1084_v52 = vpop.eup %1083 }
 0x3a1   :  { %v281_v53 = vadd.f32 1.0, %v1084_v52 }
 0x3a3   :  { %1085 = vrcp.f32 %v281_v53 }
 0x3b0   :  { %v1086_v54 = vpop.eup %1085 }
 0x3b1   :  { %v289_v59 = vmul.f32 %v1086_v54, %v287_v58 }
 0x411   :  { %v292_v55 = vpop.permute.xlu1 %291 }
 0x412   :  { %v294_v56 = vmul.f32 %v1086_v54, %v292_v55 }
 0x414   :  { %296 = vrot.lane.b32.xlu1 %v294_v56, %s1168_s21 }
 0x418   :  { %43 = vperm.xlu1 %1072, %v28_v57  }
 0x486   :  { %v297_v60 = vpop.permute.xlu1 %296 }
 0x487   :  { %v299_v61 = vadd.f32 %v297_v60, %v289_v59 }
 0x489   :  { %1087 = vtanh.f32 %v299_v61 }
 0x493   :  { %v44_v62 = vpop.permute.xlu1 %43 }
 0x494   :  { %vm62_vm4 = vcmp.eq.s32.totalorder %v44_v62, %v1193_v20 }
 0x495   :  { %980 = vmatprep.mubr.msk.f32.mxu0 %vm62_vm4, %v1163_v22 }
 0x496   :  { %v1088_v63 = vpop.eup %1087 }
 0x497   :  { %302 = vrot.lane.b32.xlu0 %v1088_v63, %s1164_s1 }
 0x49b   :  { %46 = vperm.xlu0 %1071, %v29_v0  }
 0x509   :  { %v303_v1 = vpop.permute.xlu0 %302 }
 0x50a   :  { %v305_v2 = vmul.f32 %v1086_v54, %v303_v1 }
 0x50c   :  { %v306_v3 = vpack.c.bf16 %v305_v2, %v305_v2 }
 0x50e   :  { %308 = vrot.lane.b32.xlu1 %v306_v3, %s1168_s21 }
 0x516   :  { %v47_v4 = vpop.permute.xlu0 %46 }
 0x517   :  { %vm63_vm5 = vcmp.eq.s32.totalorder %v47_v4, %v1193_v20 }
 0x518   :  { %981 = vmatmul.mubr.msk.f32.gmra.mxu0 %vm63_vm5, %v1163_v22 }
 0x580   :  { %v309_v5 = vpop.permute.xlu1 %308 }
 0x581   :  { %1002 = vmatmul.mubr.msk.bf16.vlgmr.msra.gmra.mxu1 %vm233_vm3, %v309_v5 }
 0x582   :  { %1006 = vmatpush3.bf16.msra.mxu1 %v1201_v37  ;;  %1009 = vmatprep.mubr.msk.bf16.mxu1 %vm1166_vm2, %v1165_v36 }
 0x583   :  { %1007 = vmatprep.subr.bf16.mxu1 %v1165_v36 }
 0x586   :  { %1008 = vmatpush3.bf16.msra.mxu1 %v1207_v39 }
 0x587   :  { %1013 = vmatprep.subr.bf16.mxu1 %v1165_v36 }
 0x5d8   :  { %v982_v6 = vpop.f32.mrf.mxu0 }
 0x5da   :  { %v176_v7 = vpop.f32.mrf.mxu0 }
 0x641   :  { %v347_v8 = vpop.f32.mrf.mxu1 }
 0x642   :  { %v353_v9 = vadd.f32 %v347_v8, %v176_v7 }
 0x643   :  { %v1003_v10 = vpop.f32.mrf.mxu1 }
 0x644   :  { %1089 = vtanh.f32 %v353_v9  ;;  %v879_v14 = vmul.f32 -1.442695, %v353_v9 }
 0x645   :  { %v350_v11 = vpop.f32.mrf.mxu1 }
 0x646   :  { %1091 = vpow2.f32 %v879_v14 }
 0x647   :  { %v1004_v12 = vpop.f32.mrf.mxu1 }
 0x651   :  { %v1090_v13 = vpop.eup %1089 }
 0x652   :  { %363 = vrot.lane.b32.xlu0 %v1090_v13, %s1164_s1 }
 0x653   :  { %v1092_v15 = vpop.eup %1091 }
 0x654   :  { %v357_v16 = vadd.f32 1.0, %v1092_v15 }
 0x656   :  { %1093 = vrcp.f32 %v357_v16 }
 0x663   :  { %v1094_v17 = vpop.eup %1093 }
 0x664   :  { %v361_v21 = vmul.f32 %v1094_v17, %v299_v61 }
 0x6c4   :  { %v364_v18 = vpop.permute.xlu0 %363 }
 0x6c5   :  { %v366_v19 = vmul.f32 %v1094_v17, %v364_v18 }
 0x6c7   :  { %368 = vrot.lane.b32.xlu1 %v366_v19, %s1168_s21 }
 0x739   :  { %v369_v23 = vpop.permute.xlu1 %368 }
 0x73a   :  { %v371_v24 = vadd.f32 %v369_v23, %v361_v21 }
 0x73c   :  { %1095 = vtanh.f32 %v371_v24 }
 0x749   :  { %v1096_v25 = vpop.eup %1095 }
 0x74a   :  { %374 = vrot.lane.b32.xlu0 %v1096_v25, %s1164_s1 }
 0x7bc   :  { %v375_v26 = vpop.permute.xlu0 %374 }
 0x7bd   :  { %v377_v27 = vmul.f32 %v1094_v17, %v375_v26 }
 0x7bf   :  { %v378_v28 = vpack.c.bf16 %v377_v27, %v377_v27 }
 0x7c1   :  { %380 = vrot.lane.b32.xlu1 %v378_v28, %s1168_s21 }
 0x833   :  { %v381_v29 = vpop.permute.xlu1 %380 }
 0x834   :  { %1010 = vmatmul.mubr.msk.bf16.vlgmr.msra.gmra.mxu1 %vm233_vm3, %v381_v29 }
 0x835   :  { %1014 = vmatpush3.bf16.msra.mxu1 %v1201_v37  ;;  %1017 = vmatprep.mubr.msk.bf16.mxu1 %vm1166_vm2, %v1165_v36 }
 0x836   :  { %1015 = vmatprep.subr.bf16.mxu1 %v1165_v36 }
 0x839   :  { %1016 = vmatpush3.bf16.msra.mxu1 %v1207_v39 }
 0x83a   :  { %1021 = vmatprep.subr.bf16.mxu1 %v1165_v36 }
 0x8f4   :  { %v419_v30 = vpop.f32.mrf.mxu1 }
 0x8f5   :  { %v425_v31 = vadd.f32 %v982_v6, %v419_v30 }
 0x8f6   :  { %v1011_v32 = vpop.f32.mrf.mxu1 }
 0x8f7   :  { %1097 = vtanh.f32 %v425_v31  ;;  %v881_v38 = vmul.f32 -1.442695, %v425_v31 }
 0x8f8   :  { %v422_v33 = vpop.f32.mrf.mxu1 }
 0x8f9   :  { %1099 = vpow2.f32 %v881_v38  ;;  %v33_v33 = vld [vmem:[%s1327_s0 + $0x38] sm:$0xff] }
 0x8fa   :  { %v1012_v34 = vpop.f32.mrf.mxu1 }
 0x904   :  { %v1098_v35 = vpop.eup %1097 }
 0x905   :  { %435 = vrot.lane.b32.xlu0 %v1098_v35, %s1164_s1 }
 0x906   :  { %v1100_v40 = vpop.eup %1099 }
 0x907   :  { %v429_v41 = vadd.f32 1.0, %v1100_v40 }
 0x909   :  { %1101 = vrcp.f32 %v429_v41 }
 0x916   :  { %v1102_v42 = vpop.eup %1101 }
 0x917   :  { %v433_v46 = vmul.f32 %v1102_v42, %v371_v24 }
 0x977   :  { %v436_v43 = vpop.permute.xlu0 %435 }
 0x978   :  { %v438_v44 = vmul.f32 %v1102_v42, %v436_v43 }
 0x97a   :  { %440 = vrot.lane.b32.xlu1 %v438_v44, %s1168_s21 }
 0x97e   :  { %49 = vperm.xlu1 %1072, %v30_v45  }
 0x9ec   :  { %v441_v47 = vpop.permute.xlu1 %440 }
 0x9ed   :  { %v443_v48 = vadd.f32 %v441_v47, %v433_v46 }
 0x9ef   :  { %1103 = vtanh.f32 %v443_v48 }
 0x9f9   :  { %v50_v49 = vpop.permute.xlu1 %49 }
 0x9fa   :  { %vm64_vm6 = vcmp.eq.s32.totalorder %v50_v49, %v1193_v20 }
 0x9fb   :  { %983 = vmatprep.mubr.msk.f32.mxu0 %vm64_vm6, %v1163_v22 }
 0x9fc   :  { %v1104_v50 = vpop.eup %1103 }
 0x9fd   :  { %446 = vrot.lane.b32.xlu0 %v1104_v50, %s1164_s1 }
 0xa01   :  { %52 = vperm.xlu0 %1071, %v31_v51  }
 0xa6f   :  { %v447_v52 = vpop.permute.xlu0 %446 }
 0xa70   :  { %v449_v53 = vmul.f32 %v1102_v42, %v447_v52 }
 0xa72   :  { %v450_v54 = vpack.c.bf16 %v449_v53, %v449_v53 }
 0xa74   :  { %452 = vrot.lane.b32.xlu1 %v450_v54, %s1168_s21 }
 0xa7c   :  { %v53_v55 = vpop.permute.xlu0 %52 }
 0xa7d   :  { %vm65_vm7 = vcmp.eq.s32.totalorder %v53_v55, %v1193_v20 }
 0xa7e   :  { %984 = vmatmul.mubr.msk.f32.gmra.mxu0 %vm65_vm7, %v1163_v22 }
 0xae6   :  { %v453_v56 = vpop.permute.xlu1 %452 }
 0xae7   :  { %1018 = vmatmul.mubr.msk.bf16.vlgmr.msra.gmra.mxu1 %vm233_vm3, %v453_v56 }
 0xae8   :  { %1022 = vmatpush3.bf16.msra.mxu1 %v1201_v37  ;;  %1025 = vmatprep.mubr.msk.bf16.mxu1 %vm1166_vm2, %v1165_v36 }
 0xae9   :  { %1023 = vmatprep.subr.bf16.mxu1 %v1165_v36 }
 0xaec   :  { %1024 = vmatpush3.bf16.msra.mxu1 %v1207_v39 }
 0xaed   :  { %1037 = vmatprep.subr.bf16.mxu1 %v1165_v36 }
 0xb3e   :  { %v985_v57 = vpop.f32.mrf.mxu0 }
 0xb40   :  { %v186_v58 = vpop.f32.mrf.mxu0 }
 0xba7   :  { %v491_v59 = vpop.f32.mrf.mxu1 }
 0xba8   :  { %v497_v60 = vadd.f32 %v491_v59, %v186_v58 }
 0xba9   :  { %v1019_v61 = vpop.f32.mrf.mxu1 }
 0xbaa   :  { %1105 = vtanh.f32 %v497_v60  ;;  %v883_v1 = vmul.f32 -1.442695, %v497_v60 }
 0xbab   :  { %v494_v62 = vpop.f32.mrf.mxu1 }
 0xbac   :  { %1107 = vpow2.f32 %v883_v1 }
 0xbad   :  { %v1020_v63 = vpop.f32.mrf.mxu1 }
 0xbb7   :  { %v1106_v0 = vpop.eup %1105 }
 0xbb8   :  { %507 = vrot.lane.b32.xlu0 %v1106_v0, %s1164_s1 }
 0xbb9   :  { %v1108_v2 = vpop.eup %1107 }
 0xbba   :  { %v501_v3 = vadd.f32 1.0, %v1108_v2 }
 0xbbc   :  { %1109 = vrcp.f32 %v501_v3 }
 0xbc9   :  { %v1110_v4 = vpop.eup %1109 }
 0xbca   :  { %v505_v7 = vmul.f32 %v1110_v4, %v443_v48 }
 0xc2a   :  { %v508_v5 = vpop.permute.xlu0 %507 }
 0xc2b   :  { %v510_v6 = vmul.f32 %v1110_v4, %v508_v5 }
 0xc2d   :  { %512 = vrot.lane.b32.xlu1 %v510_v6, %s1168_s21 }
 0xc9f   :  { %v513_v8 = vpop.permute.xlu1 %512 }
 0xca0   :  { %v515_v9 = vadd.f32 %v513_v8, %v505_v7 }
 0xca2   :  { %1111 = vtanh.f32 %v515_v9 }
 0xcaf   :  { %v1112_v10 = vpop.eup %1111 }
 0xcb0   :  { %518 = vrot.lane.b32.xlu0 %v1112_v10, %s1164_s1 }
 0xd22   :  { %v519_v11 = vpop.permute.xlu0 %518 }
 0xd23   :  { %v521_v12 = vmul.f32 %v1110_v4, %v519_v11 }
 0xd25   :  { %v522_v13 = vpack.c.bf16 %v521_v12, %v521_v12 }
 0xd27   :  { %524 = vrot.lane.b32.xlu1 %v522_v13, %s1168_s21  ;;  %v740_v13 = vld [vmem:[#allocation2 + $0xb0] sm:$0xff] }
 0xd99   :  { %v525_v14 = vpop.permute.xlu1 %524 }
 0xd9a   :  { %1026 = vmatmul.mubr.msk.bf16.vlgmr.msra.gmra.mxu1 %vm233_vm3, %v525_v14  ;;  %v741_v14 = vld [vmem:[#allocation2 + $0xb8] sm:$0xff] }
 0xd9b   :  { %1038 = vmatpush3.bf16.msra.mxu1 %v1201_v37  ;;  %1041 = vmatprep.mubr.msk.bf16.mxu1 %vm1166_vm2, %v1165_v36 }
 0xd9c   :  { %1039 = vmatprep.subr.bf16.mxu1 %v1165_v36 }
 0xd9f   :  { %1040 = vmatpush3.bf16.msra.mxu1 %v1207_v39  ;;  %v32_v39 = vld [vmem:[%s1327_s0 + $0x30] sm:$0xff] }
 0xda0   :  { %1053 = vmatprep.subr.bf16.mxu1 %v1165_v36 }
 0xe5a   :  { %v563_v15 = vpop.f32.mrf.mxu1 }
 0xe5b   :  { %v569_v16 = vadd.f32 %v985_v57, %v563_v15  ;;  %v738_v15 = vld [vmem:[#allocation2 + $0xa0] sm:$0xff] }
 0xe5c   :  { %v1027_v17 = vpop.f32.mrf.mxu1 }
 0xe5d   :  { %1113 = vtanh.f32 %v569_v16  ;;  %v885_v23 = vmul.f32 -1.442695, %v569_v16  ;;  %v743_v16 = vpack.c.bf16 %v741_v14, %v740_v13  ;;  %v739_v17 = vld [vmem:[#allocation2 + $0xa8] sm:$0xff] }
 0xe5e   :  { %v566_v18 = vpop.f32.mrf.mxu1 }
 0xe5f   :  { %1115 = vpow2.f32 %v885_v23  ;;  %v742_v18 = vpack.c.bf16 %v739_v17, %v738_v15  ;;  %v800_v23 = vld [vmem:[#allocation2 + $0xe0] sm:$0xff] }
 0xe60   :  { %v1028_v19 = vpop.f32.mrf.mxu1 }
 0xe6a   :  { %v1114_v21 = vpop.eup %1113 }
 0xe6b   :  { %579 = vrot.lane.b32.xlu0 %v1114_v21, %s1164_s1  ;;  %v799_v21 = vld [vmem:[#allocation2 + $0xd8] sm:$0xff] }
 0xe6c   :  { %v1116_v37 = vpop.eup %1115 }
 0xe6d   :  { %v573_v24 = vadd.f32 1.0, %v1116_v37  ;;  %v802_v37 = vpack.c.bf16 %v800_v23, %v799_v21 }
 0xe6f   :  { %1117 = vrcp.f32 %v573_v24 }
 0xe7c   :  { %v1118_v25 = vpop.eup %1117 }
 0xe7d   :  { %v577_v28 = vmul.f32 %v1118_v25, %v515_v9 }
 0xedd   :  { %v580_v26 = vpop.permute.xlu0 %579 }
 0xede   :  { %v582_v27 = vmul.f32 %v1118_v25, %v580_v26 }
 0xee0   :  { %584 = vrot.lane.b32.xlu1 %v582_v27, %s1168_s21 }
 0xee4   :  { %55 = vperm.xlu1 %1072, %v32_v39   ;;  %v797_v39 = vld [vmem:[#allocation2 + $0xc8] sm:$0xff] }
 0xf52   :  { %v585_v29 = vpop.permute.xlu1 %584 }
 0xf53   :  { %v587_v30 = vadd.f32 %v585_v29, %v577_v28  ;;  %v798_v28 = vld [vmem:[#allocation2 + $0xd0] sm:$0xff] }
 0xf54   :  { %v801_v29 = vpack.c.bf16 %v798_v28, %v797_v39 }
 0xf55   :  { %1119 = vtanh.f32 %v587_v30 }
 0xf5f   :  { %v56_v31 = vpop.permute.xlu1 %55 }
 0xf60   :  { %vm66_vm8 = vcmp.eq.s32.totalorder %v56_v31, %v1193_v20 }
 0xf61   :  { %986 = vmatprep.mubr.msk.f32.mxu0 %vm66_vm8, %v1163_v22 }
 0xf62   :  { %v1120_v32 = vpop.eup %1119 }
 0xf63   :  { %590 = vrot.lane.b32.xlu0 %v1120_v32, %s1164_s1 }
 0xf67   :  { %58 = vperm.xlu0 %1071, %v33_v33  }
 0xfd5   :  { %v591_v34 = vpop.permute.xlu0 %590 }
 0xfd6   :  { %v593_v35 = vmul.f32 %v1118_v25, %v591_v34 }
 0xfd8   :  { %v594_v38 = vpack.c.bf16 %v593_v35, %v593_v35 }
 0xfda   :  { %596 = vrot.lane.b32.xlu1 %v594_v38, %s1168_s21 }
 0xfe2   :  { %v59_v40 = vpop.permute.xlu0 %58 }
 0xfe3   :  { %vm67_vm9 = vcmp.eq.s32.totalorder %v59_v40, %v1193_v20  ;;  %v892_v40 = vld [vmem:[#allocation2 + $0xe8] ss:$0 sm:$0xff] }
 0xfe4   :  { %987 = vmatmul.mubr.msk.f32.gmra.mxu0 %vm67_vm9, %v1163_v22 }
 0xfe5   :  { %1033 = vmatprep.mubr.msk.bf16.mxu0 %vm1166_vm2, %v1165_v36 }
0x104c   :  { %v597_v41 = vpop.permute.xlu1 %596 }
0x104d   :  { %1034 = vmatmul.mubr.msk.bf16.vlgmr.msra.gmra.mxu0 %vm233_vm3, %v597_v41 }
0x104e   :  { %1049 = vmatprep.mubr.msk.bf16.mxu0 %vm1166_vm2, %v1165_v36  ;;  %1046 = vmatpush3.bf16.msra.mxu0 %v743_v16 }
0x104f   :  { %1047 = vmatprep.subr.bf16.mxu0 %v1165_v36 }
0x1052   :  { %1048 = vmatpush3.bf16.msra.mxu0 %v742_v18 }
0x10a4   :  { %v988_v42 = vpop.f32.mrf.mxu0 }
0x10a6   :  { %v196_v43 = vpop.f32.mrf.mxu0 }
0x110d   :  { %v635_v44 = vpop.f32.mrf.mxu0 }
0x110e   :  { %v641_v45 = vadd.f32 %v635_v44, %v196_v43 }
0x110f   :  { %v1035_v46 = vpop.f32.mrf.mxu0 }
0x1110   :  { %1121 = vtanh.f32 %v641_v45  ;;  %v887_v22 = vmul.f32 -1.442695, %v641_v45 }
0x1111   :  { %v638_v47 = vpop.f32.mrf.mxu0 }
0x1112   :  { %1123 = vpow2.f32 %v887_v22 }
0x1113   :  { %v1036_v48 = vpop.f32.mrf.mxu0 }
0x111d   :  { %v1122_v20 = vpop.eup %1121 }
0x111e   :  { %651 = vrot.lane.b32.xlu0 %v1122_v20, %s1164_s1 }
0x111f   :  { %v1124_v49 = vpop.eup %1123 }
0x1120   :  { %v645_v50 = vadd.f32 1.0, %v1124_v49 }
0x1122   :  { %1125 = vrcp.f32 %v645_v50 }
0x112f   :  { %v1126_v51 = vpop.eup %1125 }
0x1130   :  { %v649_v54 = vmul.f32 %v1126_v51, %v587_v30  ;;  %v890_v30 = vld [vmem:[#allocation2 + $0xc0] ss:$0 sm:$0xff] }
0x1190   :  { %v652_v52 = vpop.permute.xlu0 %651 }
0x1191   :  { %v654_v53 = vmul.f32 %v1126_v51, %v652_v52 }
0x1193   :  { %656 = vrot.lane.b32.xlu1 %v654_v53, %s1168_s21 }
0x1205   :  { %v657_v55 = vpop.permute.xlu1 %656 }
0x1206   :  { %v659_v56 = vadd.f32 %v657_v55, %v649_v54 }
0x1208   :  { %1127 = vtanh.f32 %v659_v56 }
0x1215   :  { %v1128_v57 = vpop.eup %1127 }
0x1216   :  { %662 = vrot.lane.b32.xlu0 %v1128_v57, %s1164_s1 }
0x1288   :  { %v663_v58 = vpop.permute.xlu0 %662 }
0x1289   :  { %v665_v59 = vmul.f32 %v1126_v51, %v663_v58 }
0x128b   :  { %v666_v60 = vpack.c.bf16 %v665_v59, %v665_v59 }
0x128d   :  { %668 = vrot.lane.b32.xlu1 %v666_v60, %s1168_s21 }
0x12ff   :  { %v669_v61 = vpop.permute.xlu1 %668 }
0x1300   :  { %1042 = vmatmul.mubr.msk.bf16.vlgmr.msra.gmra.mxu1 %vm233_vm3, %v669_v61 }
0x1301   :  { %1057 = vmatprep.mubr.msk.bf16.mxu1 %vm1166_vm2, %v1165_v36  ;;  %1054 = vmatpush3.bf16.msra.mxu1 %v802_v37 }
0x1302   :  { %1055 = vmatprep.subr.bf16.mxu1 %v1165_v36 }
0x1305   :  { %1056 = vmatpush3.bf16.msra.mxu1 %v801_v29 }
0x13c0   :  { %v707_v62 = vpop.f32.mrf.mxu1 }
0x13c1   :  { %v713_v63 = vadd.f32 %v988_v42, %v707_v62 }
0x13c2   :  { %v1043_v0 = vpop.f32.mrf.mxu1 }
0x13c3   :  { %1129 = vtanh.f32 %v713_v63  ;;  %v889_v4 = vmul.f32 -1.442695, %v713_v63 }
0x13c4   :  { %v710_v1 = vpop.f32.mrf.mxu1 }
0x13c5   :  { %1131 = vpow2.f32 %v889_v4 }
0x13c6   :  { %v1044_v2 = vpop.f32.mrf.mxu1 }
0x13d0   :  { %v1130_v3 = vpop.eup %1129 }
0x13d1   :  { %723 = vrot.lane.b32.xlu0 %v1130_v3, %s1164_s1 }
0x13d2   :  { %v1132_v5 = vpop.eup %1131 }
0x13d3   :  { %v717_v6 = vadd.f32 1.0, %v1132_v5 }
0x13d5   :  { %1133 = vrcp.f32 %v717_v6 }
0x13e2   :  { %v1134_v7 = vpop.eup %1133 }
0x13e3   :  { %v721_v10 = vmul.f32 %v1134_v7, %v659_v56 }
0x1443   :  { %v724_v8 = vpop.permute.xlu0 %723 }
0x1444   :  { %v726_v9 = vmul.f32 %v1134_v7, %v724_v8 }
0x1446   :  { %728 = vrot.lane.b32.xlu1 %v726_v9, %s1168_s21 }
0x14b8   :  { %v729_v11 = vpop.permute.xlu1 %728 }
0x14b9   :  { %v731_v12 = vadd.f32 %v729_v11, %v721_v10 }
0x14bb   :  { %1135 = vtanh.f32 %v731_v12 }
0x14c8   :  { %v1136_v19 = vpop.eup %1135 }
0x14c9   :  { %734 = vrot.lane.b32.xlu0 %v1136_v19, %s1164_s1 }
0x153b   :  { %v735_v24 = vpop.permute.xlu0 %734 }
0x153c   :  { %v737_v25 = vmul.f32 %v1134_v7, %v735_v24 }
0x153e   :  { %v745_v26 = vpack.c.bf16 %v737_v25, %v737_v25 }
0x1540   :  { %751 = vrot.lane.b32.xlu1 %v745_v26, %s1168_s21 }
0x15b2   :  { %v752_v27 = vpop.permute.xlu1 %751 }
0x15b3   :  { %1050 = vmatmul.mubr.msk.bf16.vlgmr.msra.gmra.mxu0 %vm233_vm3, %v752_v27 }
0x1673   :  { %v790_v31 = vpop.f32.mrf.mxu0 }
0x1674   :  { %v791_v32 = vadd.f32 %v890_v30, %v790_v31 }
0x1675   :  { %v1051_v33 = vpop.f32.mrf.mxu0 }
0x1676   :  { %v796_v34 = vmax.f32 %v791_v32, 0.0 }
0x1677   :  { %v793_v35 = vpop.f32.mrf.mxu0 }
0x1678   :  { %v804_v38 = vpack.c.bf16 %v796_v34, %v796_v34 }
0x1679   :  { %v1052_v36 = vpop.f32.mrf.mxu0 }
0x167a   :  { %1058 = vmatmul.mubr.msk.bf16.vlgmr.msra.gmra.mxu1 %vm233_vm3, %v804_v38 }
0x173a   :  { %v846_v41 = vpop.f32.mrf.mxu1 }
0x173b   :  { %v847_v42 = vadd.f32 %v892_v40, %v846_v41 }
0x173c   :  { %v1059_v43 = vpop.f32.mrf.mxu1 }
0x173d   :  { %v852_v44 = vmax.f32 %v847_v42, 0.0 }
0x173e   :  { %v849_v45 = vpop.f32.mrf.mxu1 }
0x173f   :  { %853 = vst.msk [vmem:[%s1329_s2] sm:$0xff] %vm233_vm3, %v852_v44 }
0x1740   :  { %v1060_v46 = vpop.f32.mrf.mxu1 }
0x1741   :  { %858 = vsyncpa [#allocation3], 1 }

</bundles_post_ra>
